<compile_context>
chip_gen: v5e
topology: v5e:2x2
jax: 0.10.0
libtpu: 0.0.40
codegen_flags: <defaults>
</compile_context>

<pallas_src>
import functools

import jax
import jax.numpy as jnp
from jax.experimental import pallas as pl
from jax.experimental.pallas import tpu as pltpu


_LANE = 512              # lane-dense width (multiple of 128)
_TARGET_TILE_ROWS = 512  # ~1 MiB f32 block per input (512 * 512 * 4 B)
_NUM_SHARDS = 2          # leading "parallel" grid axis (2 TCs on v7x)
_ACC_ROWS = 8            # sublane depth of the resident accumulators


def _round_up(x, m):
    return ((x + m - 1) // m) * m


def _cdiv(a, b):
    return -(-a // b)


def _rmse_flow_comb_kernel(sim_ref, obs_ref, s1_ref, c1_ref, s2_ref, c2_ref, *, beta):
    # sim/obs tiles: (tile_m, _LANE). Accumulators: (1, 8, _LANE) f32 slabs,
    # resident across the inner ("arbitrary") grid axis, one slab per shard.
    @pl.when(pl.program_id(1) == 0)
    def _():
        s1_ref[...] = jnp.zeros_like(s1_ref)
        c1_ref[...] = jnp.zeros_like(c1_ref)
        s2_ref[...] = jnp.zeros_like(s2_ref)
        c2_ref[...] = jnp.zeros_like(c2_ref)

    sim = sim_ref[...].astype(jnp.float32)
    obs = obs_ref[...].astype(jnp.float32)
    tile_m, lane = sim.shape
    groups = tile_m // _ACC_ROWS

    # --- plain RMSE contribution, masked on obs == obs (not-NaN) ---
    mask1 = obs == obs
    d1 = jnp.where(mask1, sim - obs, 0.0)
    sq1 = d1 * d1
    cnt1 = mask1.astype(jnp.float32)

    # --- RMSE in log10(sqrt(. + beta) + 0.1) space ---
    p1 = jnp.log10(jnp.sqrt(sim + beta) + 0.1)
    t1 = jnp.log10(jnp.sqrt(obs + beta) + 0.1)
    # (t1 == t1) evaluated on the VPU: t1 is NaN iff obs is NaN or obs+beta < 0.
    mask2 = jnp.logical_and(mask1, (obs + beta) >= 0.0)
    d2 = jnp.where(mask2, p1 - t1, 0.0)
    sq2 = d2 * d2
    cnt2 = mask2.astype(jnp.float32)

    def fold(x):
        # (tile_m, lane) -> (1, 8, lane); leading-axis sum lowers to VPU adds.
        return jnp.sum(x.reshape(groups, _ACC_ROWS, lane), axis=0)[None]

    s1_ref[...] += fold(sq1)
    c1_ref[...] += fold(cnt1)
    s2_ref[...] += fold(sq2)
    c2_ref[...] += fold(cnt2)


def _masked_sums_pallas(sim_flow, obs_flow, beta):
    total = obs_flow.size
    rows = max(_cdiv(total, _LANE), 1)

    # Tile rows: big tiles for big inputs, but don't force a full target tile
    # per shard when the data is small (keeps padding waste low).
    tile_m = min(_TARGET_TILE_ROWS,
                 _round_up(max(_cdiv(rows, _NUM_SHARDS), 1), _ACC_ROWS))
    num_tiles = _round_up(max(_cdiv(rows, tile_m), 1), _NUM_SHARDS)
    rows_padded = num_tiles * tile_m
    pad = rows_padded * _LANE - total

    # Lane-dense layout. Padding is mask-safe: NaN obs entries are excluded by
    # both masks; padded sim entries use a finite value (0).
    sim2d = jnp.pad(sim_flow.reshape(-1), (0, pad),
                    constant_values=0).reshape(rows_padded, _LANE)
    obs2d = jnp.pad(obs_flow.reshape(-1), (0, pad),
                    constant_values=float("nan")).reshape(rows_padded, _LANE)

    inner = num_tiles // _NUM_SHARDS
    grid = (_NUM_SHARDS, inner)

    acc_shape = jax.ShapeDtypeStruct((_NUM_SHARDS, _ACC_ROWS, _LANE), jnp.float32)
    acc_spec = pl.BlockSpec((1, _ACC_ROWS, _LANE), lambda c, i: (c, 0, 0))
    in_spec = pl.BlockSpec((tile_m, _LANE), lambda c, i: (c * inner + i, 0))

    kernel = functools.partial(_rmse_flow_comb_kernel, beta=beta)
    s1, c1, s2, c2 = pl.pallas_call(
        kernel,
        out_shape=(acc_shape, acc_shape, acc_shape, acc_shape),
        grid_spec=pltpu.PrefetchScalarGridSpec(
            num_scalar_prefetch=0,
            grid=grid,
            in_specs=[in_spec, in_spec],
            out_specs=[acc_spec, acc_spec, acc_spec, acc_spec],
        ),
        compiler_params=pltpu.CompilerParams(
            dimension_semantics=("parallel", "arbitrary"),
        ),
    )(sim2d, obs2d)
    return jnp.sum(s1), jnp.sum(c1), jnp.sum(s2), jnp.sum(c2)


def rmse_loss_flow_comb(args, y_sim, y_obs, igrid=None, alpha=0.25, beta=1e-6):
    """JAX/Pallas equivalent of RmseLossFlowComb.forward."""
    var_tar = args["target"]
    obs_flow = y_obs[:, :, var_tar.index("00060_Mean")]  # (T, B)
    if not isinstance(y_sim, dict):
        y_sim = {"flow_sim": y_sim}
    sim_flow = jnp.squeeze(y_sim["flow_sim"])  # (T, B)

    if obs_flow.shape[0] == 0:
        return jnp.float32(0.0)

    # Note: dtypes pass through (bf16 stays bf16 on the wire; cast in-kernel).
    sum1, cnt1, sum2, cnt2 = _masked_sums_pallas(sim_flow, obs_flow, beta)
    loss_flow1 = jnp.sqrt(sum1 / cnt1)
    loss_flow2 = jnp.sqrt(sum2 / cnt2)
    return (1.0 - alpha) * loss_flow1 + alpha * loss_flow2


def _reference_jax(args, y_sim, y_obs, alpha=0.25, beta=1e-6):
    """Pure-JAX reference mirroring the PyTorch masked-indexing semantics."""
    obs = y_obs[:, :, args["target"].index("00060_Mean")]
    sim = jnp.squeeze(y_sim)
    m1 = obs == obs
    d1 = jnp.where(m1, sim - obs, 0.0)
    l1 = jnp.sqrt(jnp.sum(d1 * d1) / jnp.sum(m1))
    p1 = jnp.log10(jnp.sqrt(sim + beta) + 0.1)
    t1 = jnp.log10(jnp.sqrt(obs + beta) + 0.1)
    m2 = t1 == t1
    d2 = jnp.where(m2, p1 - t1, 0.0)
    l2 = jnp.sqrt(jnp.sum(d2 * d2) / jnp.sum(m2))
    return (1.0 - alpha) * l1 + alpha * l2


if __name__ == "__main__":
    key = jax.random.PRNGKey(0)
    T, B, NV = 16, 32, 4  # time steps, basins, observed variables

    k_sim, k_obs, k_nan = jax.random.split(key, 3)
    # Non-negative streamflow-like values.
    y_sim = jax.random.uniform(k_sim, (T, B, 1), jnp.float32, 0.0, 10.0)
    y_obs = jax.random.uniform(k_obs, (T, B, NV), jnp.float32, 0.0, 10.0)
    # Inject missing observations (NaN) into the streamflow target column.
    nan_mask = jax.random.bernoulli(k_nan, 0.2, (T, B))
    flow_col = jnp.where(nan_mask, jnp.nan, y_obs[:, :, 1])
    y_obs = y_obs.at[:, :, 1].set(flow_col)

    args = {"target": ["00010_Mean", "00060_Mean", "00095_Mean", "80154_Mean"]}
    igrid = jnp.arange(B)  # unused by the loss, kept for signature parity

    loss = rmse_loss_flow_comb(args, y_sim, y_obs, igrid)
    loss = jax.block_until_ready(loss)

    ref = _reference_jax(args, y_sim, y_obs)
    assert jnp.allclose(loss, ref, rtol=1e-5, atol=1e-5), (loss, ref)

    print("KERNEL_OK")
</pallas_src>

<mosaic_0001>
module attributes {stable_mosaic.version = 11 : i64} {
  func.func @_rmse_flow_comb_kernel(%arg0: i32, %arg1: i32, %arg2: memref<8x512xf32, #tpu.memory_space<vmem>>, %arg3: memref<8x512xf32, #tpu.memory_space<vmem>>, %arg4: memref<1x8x512xf32, #tpu.memory_space<vmem>>, %arg5: memref<1x8x512xf32, #tpu.memory_space<vmem>>, %arg6: memref<1x8x512xf32, #tpu.memory_space<vmem>>, %arg7: memref<1x8x512xf32, #tpu.memory_space<vmem>>) attributes {dimension_semantics = [#tpu.dimension_semantics<parallel>, #tpu.dimension_semantics<arbitrary>], iteration_bounds = array<i64: 2, 1>, scalar_prefetch = 0 : i64, scratch_operands = 0 : i64, tpu.core_type = #tpu.core_type<tc>, window_params = [{transform_indices = @transform_0, window_bounds = array<i64: 8, 512>}, {transform_indices = @transform_1, window_bounds = array<i64: 8, 512>}, {transform_indices = @transform_2, window_bounds = array<i64: 1, 8, 512>}, {transform_indices = @transform_3, window_bounds = array<i64: 1, 8, 512>}, {transform_indices = @transform_4, window_bounds = array<i64: 1, 8, 512>}, {transform_indices = @transform_5, window_bounds = array<i64: 1, 8, 512>}]} {
    %c0_i32 = arith.constant 0 : i32
    %0 = arith.cmpi eq, %arg1, %c0_i32 : i32
    %1 = arith.extui %0 : i1 to i32
    %c0_i32_0 = arith.constant 0 : i32
    %2 = arith.cmpi ne, %1, %c0_i32_0 : i32
    scf.if %2 {
      %cst_41 = arith.constant 0.000000e+00 : f32
      %63 = vector.broadcast %cst_41 : f32 to vector<1x8x512xf32>
      %c0_42 = arith.constant 0 : index
      %c0_43 = arith.constant 0 : index
      %c0_44 = arith.constant 0 : index
      %64 = vector.load %arg4[%c0_42, %c0_43, %c0_44] : memref<1x8x512xf32, #tpu.memory_space<vmem>>, vector<1x8x512xf32>
      tpu.vector_store %arg4[%c0_42, %c0_43, %c0_44], %63 {strides = array<i32>} : memref<1x8x512xf32, #tpu.memory_space<vmem>>, vector<1x8x512xf32>,
      %cst_45 = arith.constant 0.000000e+00 : f32
      %65 = vector.broadcast %cst_45 : f32 to vector<1x8x512xf32>
      %c0_46 = arith.constant 0 : index
      %c0_47 = arith.constant 0 : index
      %c0_48 = arith.constant 0 : index
      %66 = vector.load %arg5[%c0_46, %c0_47, %c0_48] : memref<1x8x512xf32, #tpu.memory_space<vmem>>, vector<1x8x512xf32>
      tpu.vector_store %arg5[%c0_46, %c0_47, %c0_48], %65 {strides = array<i32>} : memref<1x8x512xf32, #tpu.memory_space<vmem>>, vector<1x8x512xf32>,
      %cst_49 = arith.constant 0.000000e+00 : f32
      %67 = vector.broadcast %cst_49 : f32 to vector<1x8x512xf32>
      %c0_50 = arith.constant 0 : index
      %c0_51 = arith.constant 0 : index
      %c0_52 = arith.constant 0 : index
      %68 = vector.load %arg6[%c0_50, %c0_51, %c0_52] : memref<1x8x512xf32, #tpu.memory_space<vmem>>, vector<1x8x512xf32>
      tpu.vector_store %arg6[%c0_50, %c0_51, %c0_52], %67 {strides = array<i32>} : memref<1x8x512xf32, #tpu.memory_space<vmem>>, vector<1x8x512xf32>,
      %cst_53 = arith.constant 0.000000e+00 : f32
      %69 = vector.broadcast %cst_53 : f32 to vector<1x8x512xf32>
      %c0_54 = arith.constant 0 : index
      %c0_55 = arith.constant 0 : index
      %c0_56 = arith.constant 0 : index
      %70 = vector.load %arg7[%c0_54, %c0_55, %c0_56] : memref<1x8x512xf32, #tpu.memory_space<vmem>>, vector<1x8x512xf32>
      tpu.vector_store %arg7[%c0_54, %c0_55, %c0_56], %69 {strides = array<i32>} : memref<1x8x512xf32, #tpu.memory_space<vmem>>, vector<1x8x512xf32>,
    } else {
    }
    %c0 = arith.constant 0 : index
    %c0_1 = arith.constant 0 : index
    %3 = vector.load %arg2[%c0, %c0_1] : memref<8x512xf32, #tpu.memory_space<vmem>>, vector<8x512xf32>
    %c0_2 = arith.constant 0 : index
    %c0_3 = arith.constant 0 : index
    %4 = vector.load %arg3[%c0_2, %c0_3] : memref<8x512xf32, #tpu.memory_space<vmem>>, vector<8x512xf32>
    %5 = arith.cmpf oeq, %4, %4 : vector<8x512xf32>
    %6 = arith.subf %3, %4 : vector<8x512xf32>
    %cst = arith.constant 0.000000e+00 : f32
    %7 = vector.broadcast %cst : f32 to vector<8x512xf32>
    %8 = arith.select %5, %6, %7 : vector<8x512xi1>, vector<8x512xf32>
    %9 = arith.mulf %8, %8 : vector<8x512xf32>
    %10 = arith.extui %5 : vector<8x512xi1> to vector<8x512xi32>
    %11 = arith.sitofp %10 : vector<8x512xi32> to vector<8x512xf32>
    %cst_4 = arith.constant 9.99999997E-7 : f32
    %12 = vector.broadcast %cst_4 : f32 to vector<8x512xf32>
    %13 = arith.addf %3, %12 : vector<8x512xf32>
    %14 = math.sqrt %13 : vector<8x512xf32>
    %cst_5 = arith.constant 1.000000e-01 : f32
    %15 = vector.broadcast %cst_5 : f32 to vector<8x512xf32>
    %16 = arith.addf %14, %15 : vector<8x512xf32>
    %17 = math.log %16 : vector<8x512xf32>
    %cst_6 = arith.constant 0.434294492 : f32
    %18 = vector.broadcast %cst_6 : f32 to vector<8x512xf32>
    %19 = arith.mulf %17, %18 : vector<8x512xf32>
    %cst_7 = arith.constant 9.99999997E-7 : f32
    %20 = vector.broadcast %cst_7 : f32 to vector<8x512xf32>
    %21 = arith.addf %4, %20 : vector<8x512xf32>
    %22 = math.sqrt %21 : vector<8x512xf32>
    %cst_8 = arith.constant 1.000000e-01 : f32
    %23 = vector.broadcast %cst_8 : f32 to vector<8x512xf32>
    %24 = arith.addf %22, %23 : vector<8x512xf32>
    %25 = math.log %24 : vector<8x512xf32>
    %cst_9 = arith.constant 0.434294492 : f32
    %26 = vector.broadcast %cst_9 : f32 to vector<8x512xf32>
    %27 = arith.mulf %25, %26 : vector<8x512xf32>
    %cst_10 = arith.constant 9.99999997E-7 : f32
    %28 = vector.broadcast %cst_10 : f32 to vector<8x512xf32>
    %29 = arith.addf %4, %28 : vector<8x512xf32>
    %cst_11 = arith.constant 0.000000e+00 : f32
    %30 = vector.broadcast %cst_11 : f32 to vector<8x512xf32>
    %31 = arith.cmpf oge, %29, %30 : vector<8x512xf32>
    %32 = arith.andi %5, %31 : vector<8x512xi1>
    %33 = arith.subf %19, %27 : vector<8x512xf32>
    %cst_12 = arith.constant 0.000000e+00 : f32
    %34 = vector.broadcast %cst_12 : f32 to vector<8x512xf32>
    %35 = arith.select %32, %33, %34 : vector<8x512xi1>, vector<8x512xf32>
    %36 = arith.mulf %35, %35 : vector<8x512xf32>
    %37 = arith.extui %32 : vector<8x512xi1> to vector<8x512xi32>
    %38 = arith.sitofp %37 : vector<8x512xi32> to vector<8x512xf32>
    %c0_13 = arith.constant 0 : index
    %c0_14 = arith.constant 0 : index
    %c0_15 = arith.constant 0 : index
    %39 = vector.load %arg4[%c0_13, %c0_14, %c0_15] : memref<1x8x512xf32, #tpu.memory_space<vmem>>, vector<1x8x512xf32>
    %40 = vector.shape_cast %9 : vector<8x512xf32> to vector<1x8x512xf32>
    %cst_16 = arith.constant dense<0.000000e+00> : vector<8x512xf32>
    %41 = vector.multi_reduction <add>, %40, %cst_16 [0] : vector<1x8x512xf32> to vector<8x512xf32>
    %42 = vector.shape_cast %41 : vector<8x512xf32> to vector<1x8x512xf32>
    %43 = arith.addf %39, %42 : vector<1x8x512xf32>
    %c0_17 = arith.constant 0 : index
    %c0_18 = arith.constant 0 : index
    %c0_19 = arith.constant 0 : index
    %44 = vector.load %arg4[%c0_17, %c0_18, %c0_19] : memref<1x8x512xf32, #tpu.memory_space<vmem>>, vector<1x8x512xf32>
    tpu.vector_store %arg4[%c0_17, %c0_18, %c0_19], %43 {strides = array<i32>} : memref<1x8x512xf32, #tpu.memory_space<vmem>>, vector<1x8x512xf32>,
    %c0_20 = arith.constant 0 : index
    %c0_21 = arith.constant 0 : index
    %c0_22 = arith.constant 0 : index
    %45 = vector.load %arg5[%c0_20, %c0_21, %c0_22] : memref<1x8x512xf32, #tpu.memory_space<vmem>>, vector<1x8x512xf32>
    %46 = vector.shape_cast %11 : vector<8x512xf32> to vector<1x8x512xf32>
    %cst_23 = arith.constant dense<0.000000e+00> : vector<8x512xf32>
    %47 = vector.multi_reduction <add>, %46, %cst_23 [0] : vector<1x8x512xf32> to vector<8x512xf32>
    %48 = vector.shape_cast %47 : vector<8x512xf32> to vector<1x8x512xf32>
    %49 = arith.addf %45, %48 : vector<1x8x512xf32>
    %c0_24 = arith.constant 0 : index
    %c0_25 = arith.constant 0 : index
    %c0_26 = arith.constant 0 : index
    %50 = vector.load %arg5[%c0_24, %c0_25, %c0_26] : memref<1x8x512xf32, #tpu.memory_space<vmem>>, vector<1x8x512xf32>
    tpu.vector_store %arg5[%c0_24, %c0_25, %c0_26], %49 {strides = array<i32>} : memref<1x8x512xf32, #tpu.memory_space<vmem>>, vector<1x8x512xf32>,
    %c0_27 = arith.constant 0 : index
    %c0_28 = arith.constant 0 : index
    %c0_29 = arith.constant 0 : index
    %51 = vector.load %arg6[%c0_27, %c0_28, %c0_29] : memref<1x8x512xf32, #tpu.memory_space<vmem>>, vector<1x8x512xf32>
    %52 = vector.shape_cast %36 : vector<8x512xf32> to vector<1x8x512xf32>
    %cst_30 = arith.constant dense<0.000000e+00> : vector<8x512xf32>
    %53 = vector.multi_reduction <add>, %52, %cst_30 [0] : vector<1x8x512xf32> to vector<8x512xf32>
    %54 = vector.shape_cast %53 : vector<8x512xf32> to vector<1x8x512xf32>
    %55 = arith.addf %51, %54 : vector<1x8x512xf32>
    %c0_31 = arith.constant 0 : index
    %c0_32 = arith.constant 0 : index
    %c0_33 = arith.constant 0 : index
    %56 = vector.load %arg6[%c0_31, %c0_32, %c0_33] : memref<1x8x512xf32, #tpu.memory_space<vmem>>, vector<1x8x512xf32>
    tpu.vector_store %arg6[%c0_31, %c0_32, %c0_33], %55 {strides = array<i32>} : memref<1x8x512xf32, #tpu.memory_space<vmem>>, vector<1x8x512xf32>,
    %c0_34 = arith.constant 0 : index
    %c0_35 = arith.constant 0 : index
    %c0_36 = arith.constant 0 : index
    %57 = vector.load %arg7[%c0_34, %c0_35, %c0_36] : memref<1x8x512xf32, #tpu.memory_space<vmem>>, vector<1x8x512xf32>
    %58 = vector.shape_cast %38 : vector<8x512xf32> to vector<1x8x512xf32>
    %cst_37 = arith.constant dense<0.000000e+00> : vector<8x512xf32>
    %59 = vector.multi_reduction <add>, %58, %cst_37 [0] : vector<1x8x512xf32> to vector<8x512xf32>
    %60 = vector.shape_cast %59 : vector<8x512xf32> to vector<1x8x512xf32>
    %61 = arith.addf %57, %60 : vector<1x8x512xf32>
    %c0_38 = arith.constant 0 : index
    %c0_39 = arith.constant 0 : index
    %c0_40 = arith.constant 0 : index
    %62 = vector.load %arg7[%c0_38, %c0_39, %c0_40] : memref<1x8x512xf32, #tpu.memory_space<vmem>>, vector<1x8x512xf32>
    tpu.vector_store %arg7[%c0_38, %c0_39, %c0_40], %61 {strides = array<i32>} : memref<1x8x512xf32, #tpu.memory_space<vmem>>, vector<1x8x512xf32>,
    return
  }
  func.func @transform_0(%arg0: i32, %arg1: i32) -> (i32, i32) {
    %c1_i32 = arith.constant 1 : i32
    %0 = arith.muli %arg0, %c1_i32 : i32
    %1 = arith.addi %0, %arg1 : i32
    %c0_i32 = arith.constant 0 : i32
    %c0_i32_0 = arith.constant 0 : i32
    return %1, %c0_i32 : i32, i32
  }
  func.func @transform_1(%arg0: i32, %arg1: i32) -> (i32, i32) {
    %c1_i32 = arith.constant 1 : i32
    %0 = arith.muli %arg0, %c1_i32 : i32
    %1 = arith.addi %0, %arg1 : i32
    %c0_i32 = arith.constant 0 : i32
    %c0_i32_0 = arith.constant 0 : i32
    return %1, %c0_i32 : i32, i32
  }
  func.func @transform_2(%arg0: i32, %arg1: i32) -> (i32, i32, i32) {
    %c0_i32 = arith.constant 0 : i32
    %c0_i32_0 = arith.constant 0 : i32
    %c0_i32_1 = arith.constant 0 : i32
    return %arg0, %c0_i32, %c0_i32_0 : i32, i32, i32
  }
  func.func @transform_3(%arg0: i32, %arg1: i32) -> (i32, i32, i32) {
    %c0_i32 = arith.constant 0 : i32
    %c0_i32_0 = arith.constant 0 : i32
    %c0_i32_1 = arith.constant 0 : i32
    return %arg0, %c0_i32, %c0_i32_0 : i32, i32, i32
  }
  func.func @transform_4(%arg0: i32, %arg1: i32) -> (i32, i32, i32) {
    %c0_i32 = arith.constant 0 : i32
    %c0_i32_0 = arith.constant 0 : i32
    %c0_i32_1 = arith.constant 0 : i32
    return %arg0, %c0_i32, %c0_i32_0 : i32, i32, i32
  }
  func.func @transform_5(%arg0: i32, %arg1: i32) -> (i32, i32, i32) {
    %c0_i32 = arith.constant 0 : i32
    %c0_i32_0 = arith.constant 0 : i32
    %c0_i32_1 = arith.constant 0 : i32
    return %arg0, %c0_i32, %c0_i32_0 : i32, i32, i32
  }
}

</mosaic_0001>

<bundles_post_ra>
// kernel: tpu_custom_call.1
= control target key start
LH: loop header
LB: loop body
LE: loop exit
PB: predicated region body
PF: predicated region fallthrough
CT: control target
= control target key end

     0   :  { %11 = vsyncpa [#allocation3], 0  ;;  %s1780_s0 = inlined_call_operand.hbm [shape: f32[16,512], index: 0, kind: input, shape index: {}]   ;;  %s1781_s1 = inlined_call_operand.hbm [shape: f32[16,512], index: 1, kind: input, shape index: {}]   ;;  %s1782_s2 = inlined_call_operand.hbm [shape: f32[2,8,512], index: 2, kind: output, shape index: {0}]   ;;  %s1783_s3 = inlined_call_operand.hbm [shape: f32[2,8,512], index: 3, kind: output, shape index: {1}]   ;;  %s1784_s4 = inlined_call_operand.hbm [shape: f32[2,8,512], index: 4, kind: output, shape index: {2}]   ;;  %s1785_s5 = inlined_call_operand.hbm [shape: f32[2,8,512], index: 5, kind: output, shape index: {3}]  }
   0x1   :  { %13 = vsyncpa [#allocation3 + $0x1], 0 }
   0x2   :  { %14 = vsyncpa [#allocation6], 0 }
   0x3   :  { %16 = vsyncpa [#allocation6 + $0x1], 0 }
   0x4   :  { %17 = vsyncpa [#allocation4], 0 }
   0x5   :  { %19 = vsyncpa [#allocation4 + $0x1], 0 }
   0x6   :  { %20 = vsyncpa [#allocation9], 0 }
   0x7   :  { %22 = vsyncpa [#allocation9 + $0x1], 0 }
   0x8   :  { %23 = vsyncpa [#allocation12], 0 }
   0x9   :  { %25 = vsyncpa [#allocation12 + $0x1], 0  ;;  %s1318_s18 = smov 0   ;;  %s1320_s19 = smov 0  }
   0xa   :  { %s1322_s20 = smov 0   ;;  %s1324_s21 = smov 0  }
   0xb   :  { %s1326_s22 = smov 0   ;;  %s1328_s23 = smov 0  }
   0xc LB: > { %1793 = sst [smem:[#allocation18_spill]] %s1281_s22  ;;  %s1349_s24 = sadd.s32 4294967295, %s1285_s23   ;;  %s1285_s23 = sphi %s1328_s23, %s31_s23   ;;  %s1281_s22 = sphi %s1326_s22, %s1815_s22   ;;  %s1277_s21 = sphi %s1324_s21, %s1814_s21   ;;  %s1273_s20 = sphi %s1322_s20, %s1818_s20   ;;  %s1269_s19 = sphi %s1320_s19, %s1817_s19   ;;  %s1265_s18 = sphi %s1318_s18, %s1816_s18  }
   0xd   : > { %s1786_s25 = sadd.s32 4294967294, %s1285_s23   ;;  %s43_s26 = sadd.s32 1, %s1281_s22 }
   0xe   : > { %s52_s27 = sadd.s32 1, %s1273_s20  ;;  %p45_p0 = scmp.ge.s32.totalorder %s43_s26, 2 }
   0xf   : > { %p59_p1 = scmp.ne.s32.totalorder %s1273_s20, %s1269_s19  ;;  %p60_p2 = scmp.eq.s32.totalorder %s1285_s23, 0 }
  0x10   : > { %p65_p3 = scmp.ne.s32.totalorder %s1269_s19, %s1265_s18  ;;  %s1820_s26 = smov (%p45_p0, %s43_s26), 0 }
  0x11   : > { %1794 = sst [smem:[#allocation19_spill]] %s1820_s26  ;;  %p1361_p4 = por %p60_p2, %p59_p1 }
  0x12   : > { %p66_p5 = scmp.eq.s32.totalorder %s1349_s24, 0  ;;  %s49_s29 = ssub.s32 %s1281_s22, %s1820_s26 }
  0x13   : > { %p117_p6 = scmp.eq.s32.totalorder %s1349_s24, 1  ;;  %p50_p7 = scmp.eq.s32.totalorder %s49_s29, 0 }
  0x14   : > { %p1369_p8 = por %p66_p5, %p65_p3  ;;  %p123_p10 = scmp.eq.s32.totalorder %s1786_s25, 1 }
  0x15   : > { %p1373_p9 = por %p117_p6, %p59_p1  ;;  %p890_p12 = scmp.ge.s32.totalorder %s1285_s23, 2 }
  0x16   : > { %s1380_s7 = scalar_select %p50_p7, %s1273_s20, %s52_s27  }
  0x17   : > { %p1382_p11 = por %p123_p10, %p65_p3  ;;  %p964_p13 = scmp.lt.s32.totalorder %s1285_s23, 2 }
  0x18   : > { %1798 = sst [smem:[#allocation20_spill]] %s1380_s7  ;;  %s221_s9 = sand.u32 1, %s1273_s20  }
  0x19   : > { %s891_s10 = sshll.u32 %s221_s9, 5  ;;  %s926_s11 = sshll.u32 %s1281_s22, 5 }
  0x1a   : > { %s231_s14 = scalar_lea.hbm %s1780_s0, %s926_s11  ;;  %s225_s15 = scalar_lea.vmem [#allocation2], %s891_s10 }
  0x1b   : > { %s235_s16 = sshll.u32 %s225_s15, 4  ;;  %s233_s17 = sshll.u32 %s231_s14, 4  ;;  %s236_s16 = int_to_ptr.vmem [resolvable:$true] %s235_s16  ;;  %s234_s17 = int_to_ptr.hbm [resolvable:$true] %s233_s17 }
  0x1c   : > { %p945_p0 = pnand %p964_p13, %p1361_p4  ;;  %p897_p1 = scmp.ge.s32.totalorder %s1285_s23, 1 }
  0x1d   : > { %p261_p2 = scmp.lt.s32.totalorder %s1285_s23, 3  ;;  %s222_s27 = scalar_lea.sflag [#allocation3], %s221_s9 }
  0x1e   : > { %947 = dma.hbm_to_vmem [thread:$0]  (!%p945_p0), %s234_s17, 512, %s236_s16, %s222_s27  }
  0x1f   : > { %p262_p3 = pnand %p897_p1, %p261_p2  ;;  %s252_s26 = scalar_lea.hbm %s1781_s1, %s926_s11 }
  0x20   : > { %s246_s22 = scalar_lea.vmem [#allocation5], %s891_s10  ;;  %s254_s12 = sshll.u32 %s252_s26, 4  ;;  %s255_s12 = int_to_ptr.hbm [resolvable:$true] %s254_s12 }
  0x21   : > { %s256_s7 = sshll.u32 %s246_s22, 4  ;;  %s243_s13 = scalar_lea.sflag [#allocation6], %s221_s9  ;;  %s257_s7 = int_to_ptr.vmem [resolvable:$true] %s256_s7 }
  0x22   : > { %950 = dma.hbm_to_vmem [thread:$0]  (!%p945_p0), %s255_s12, 512, %s257_s7, %s243_s13  }
  0x23   : > { %265 = sbr.rel (%p262_p3) target bundleno = 128 (0x80), region = 28  ;;  %s1401_s28 = sand.u32 (!%p262_p3), 1, %s1269_s19  }
  0x24   : > { %s1404_s14 = sshll.u32 (!%p262_p3), %s1401_s28, 5  ;;  %s268_s15 = scalar_lea.sflag (!%p262_p3), [#allocation3], %s1401_s28 }
  0x25   : > { %s1408_s25 = scalar_lea.vmem (!%p262_p3), [#allocation2], %s1404_s14 }
  0x28   : > { %1244 = dma.done.wait (%p1369_p8), %s268_s15, 512  }
  0x29   : > { %1246 = vsyncadd (%p1369_p8), %s268_s15, 4294966784  ;;  %s278_s22 = scalar_lea.sflag [#allocation6], %s1401_s28  ;;  %s281_s26 = scalar_lea.vmem [#allocation5], %s1404_s14 }
  0x2a   : > { %1248 = dma.done.wait (%p1369_p8), %s278_s22, 512  }
  0x2b   : > { %1250 = vsyncadd (%p1369_p8), %s278_s22, 4294966784  ;;  %s1421_s7 = sshll.u32 %s1277_s21, 5  ;;  %v1423_v0 = vld [vmem:[%s281_s26] sm:$0xff]  ;;  %v1425_v1 = vld [vmem:[%s281_s26 + $0x8] sm:$0xff]  ;;  %v1287_v4 = vmov 0.0   ;;  %s616_s21 = sand.u32 1, %s1349_s24  }
  0x2c   : > { %s653_s11 = scalar_lea.hbm %s1783_s3, %s1421_s7  ;;  %vm1792_vm0 = vcmp.eq.f32.partialorder %v1423_v0, %v1423_v0  ;;  %v1434_v2 = vadd.f32 1e-06, %v1423_v0  ;;  %vm1791_vm1 = vcmp.eq.f32.partialorder %v1425_v1, %v1425_v1  ;;  %v1438_v3 = vld [vmem:[%s281_s26 + $0x10] sm:$0xff]  ;;  %v1450_v7 = vld [vmem:[%s281_s26 + $0x18] sm:$0xff]  ;;  %v351_v8 = vld [vmem:[%s1408_s25] sm:$0xff]  ;;  %s314_s30 = scalar_lea.vmem [#allocation8], %s1404_s14 }
  0x2d   : > { %v904_v5 = vsel %vm1792_vm0, 1.0, %v1287_v4  ;;  %v905_v6 = vsel %vm1791_vm1, 1.0, %v1287_v4  ;;  %vm1790_vm2 = vcmp.eq.f32.partialorder %v1438_v3, %v1438_v3  ;;  %v352_v9 = vld [vmem:[%s1408_s25 + $0x8] sm:$0xff]  ;;  %vm1789_vm3 = vcmp.eq.f32.partialorder %v1450_v7, %v1450_v7  ;;  %v353_v11 = vld [vmem:[%s1408_s25 + $0x10] sm:$0xff]  ;;  %s655_s16 = sshll.u32 %s314_s30, 4  ;;  %s1463_s17 = sshll.u32 %s653_s11, 4  ;;  %s1490_s16 = int_to_ptr.vmem [resolvable:$true] %s655_s16  ;;  %s658_s17 = int_to_ptr.hbm [resolvable:$true] %s1463_s17 }
  0x2e   : > { %v906_v10 = vsel %vm1790_vm2, 1.0, %v1287_v4  ;;  %v1466_v12 = vadd.f32 1e-06, %v1425_v1  ;;  %v907_v13 = vsel %vm1789_vm3, 1.0, %v1287_v4  ;;  %v363_v14 = vsub.f32 %v351_v8, %v1423_v0  ;;  %v354_v15 = vld [vmem:[%s1408_s25 + $0x18] sm:$0xff]  ;;  %575 = vst [vmem:[%s314_s30] sm:$0xff] %v904_v5  ;;  %s638_s12 = scalar_lea.hbm %s1782_s2, %s1421_s7  ;;  %s1507_s13 = scalar_lea.vmem [#allocation7], %s1404_s14 }
  0x2f   : > { %v1474_v16 = vadd.f32 1e-06, %v351_v8  ;;  %v364_v17 = vsub.f32 %v352_v9, %v1425_v1  ;;  %v1477_v18 = vadd.f32 1e-06, %v352_v9  ;;  %576 = vst [vmem:[%s314_s30 + $0x8] sm:$0xff] %v905_v6  ;;  %v365_v20 = vsub.f32 %v353_v11, %v1438_v3  ;;  %s640_s15 = sshll.u32 %s1507_s13, 4  ;;  %s641_s15 = int_to_ptr.vmem [resolvable:$true] %s640_s15 }
  0x30   : > { %v367_v19 = vsel %vm1792_vm0, %v363_v14, 0.0  ;;  %v1487_v21 = vadd.f32 1e-06, %v353_v11  ;;  %v366_v22 = vsub.f32 %v354_v15, %v1450_v7  ;;  %577 = vst [vmem:[%s314_s30 + $0x10] sm:$0xff] %v906_v10  ;;  %v1497_v25 = vadd.f32 1e-06, %v354_v15 }
  0x31   : > { %v371_v23 = vmul.f32 %v367_v19, %v367_v19  ;;  %1015 = vrsqrt.f32 %v1474_v16  ;;  %v368_v24 = vsel %vm1791_vm1, %v364_v17, 0.0  ;;  %578 = vst [vmem:[%s314_s30 + $0x18] sm:$0xff] %v907_v13  ;;  %v369_v27 = vsel %vm1790_vm2, %v365_v20, 0.0  ;;  %s1510_s25 = sshll.u32 %s638_s12, 4  ;;  %s1515_s22 = scalar_lea.sflag [#allocation9], %s616_s21  ;;  %s643_s25 = int_to_ptr.hbm [resolvable:$true] %s1510_s25 }
  0x32   : > { %v372_v26 = vmul.f32 %v368_v24, %v368_v24  ;;  %1017 = vrsqrt.f32 %v1477_v18  ;;  %v370_v28 = vsel %vm1789_vm3, %v366_v22, 0.0  ;;  %v373_v29 = vmul.f32 %v369_v27, %v369_v27  ;;  %s1121_s26 = sshra.s32 %s658_s17, 4  ;;  %s1127_s30 = scalar_lea.hbm %s1783_s3, 64  ;;  %s1122_s26 = int_to_ptr.hbm [resolvable:$true] %s1121_s26 }
  0x33   : > { %1019 = vrsqrt.f32 %v1487_v21  ;;  %v374_v30 = vmul.f32 %v370_v28, %v370_v28  ;;  %s1123_s9 = scalar_lea.hbm %s1122_s26, 32  ;;  %p1128_p7 = scmp.lt.s32.totalorder %s1122_s26, %s1783_s3 }
  0x34   : > { %p1124_p4 = scmp.ne.s32.totalorder %s1122_s26, %s1123_s9  ;;  %p1129_p8 = scmp.lt.s32.totalorder %s1127_s30, %s1123_s9 }
  0x36   : > { %p1125_p5 = pnand %p1124_p4, %p1373_p9  ;;  %p1130_p10 = por %p1129_p8, %p1128_p7 }
  0x38   : > { %p1126_p6 = pneg %p1125_p5 }
  0x3a   : > { %p1131_p13 = pnand %p1130_p10, %p1126_p6 }
  0x3c   : > { %1134 = shalt.err (!%p1131_p13)
}
  0x3d   : > { %937 = dma.vmem_to_hbm [thread:$0]  (%p1373_p9), %s1490_s16, 512, %s658_s17, %s1515_s22   ;;  %1021 = vrsqrt.f32 %v1497_v25  ;;  %559 = vst [vmem:[%s1507_s13] sm:$0xff] %v371_v23  ;;  %v1537_v31 = vadd.f32 1e-06, %v1438_v3  ;;  %v1016_v32 = vpop.eup %1015  ;;  %v1544_v34 = vadd.f32 1e-06, %v1450_v7  ;;  %vm394_vm4 = vcmp.eq.f32.partialorder %v1474_v16, inf }
  0x3e   : > { %1023 = vrsqrt.f32 %v1434_v2  ;;  %560 = vst [vmem:[%s1507_s13 + $0x8] sm:$0xff] %v372_v26  ;;  %v1018_v33 = vpop.eup %1017  ;;  %v388_v35 = vmul.f32 %v1016_v32, %v1474_v16  ;;  %v397_v37 = vand.u32 2147483648, %v1474_v16  ;;  %v465_v38 = vand.u32 2147483648, %v1434_v2  ;;  %s612_s24 = scalar_lea.sflag [#allocation4], %s1401_s28  ;;  %s1149_s21 = sshra.s32 %s643_s25, 4  ;;  %s1150_s21 = int_to_ptr.hbm [resolvable:$true] %s1149_s21 }
  0x3f   : > { %561 = vst [vmem:[%s1507_s13 + $0x10] sm:$0xff] %v373_v29  ;;  %1025 = vrsqrt.f32 %v1466_v12  ;;  %v1548_v36 = vpop.eup %1019  ;;  %v400_v39 = vmul.f32 %v1018_v33, %v1477_v18  ;;  %s1151_s16 = scalar_lea.hbm %s1150_s21, 32  ;;  %p1156_p3 = scmp.lt.s32.totalorder %s1150_s21, %s1782_s2 }
  0x40   : > { %562 = vst [vmem:[%s1507_s13 + $0x18] sm:$0xff] %v374_v30  ;;  %p1152_p0 = scmp.ne.s32.totalorder %s1150_s21, %s1151_s16  ;;  %s1155_s13 = scalar_lea.hbm %s1782_s2, 64 }
  0x41   : > { %p1157_p4 = scmp.lt.s32.totalorder %s1155_s13, %s1151_s16 }
  0x42   : > { %p1153_p1 = pnand %p1152_p0, %p1373_p9 }
  0x43   : > { %p1158_p5 = por %p1157_p4, %p1156_p3 }
  0x44   : > { %p1154_p2 = pneg %p1153_p1 }
  0x46   : > { %p1159_p6 = pnand %p1158_p5, %p1154_p2 }
  0x48   : > { %1162 = shalt.err (!%p1159_p6)
}
  0x49   : > { %936 = dma.vmem_to_hbm [thread:$0]  (%p1373_p9), %s641_s15, 512, %s643_s25, %s612_s24   ;;  %v1022_v40 = vpop.eup %1021  ;;  %v389_v41 = vmul.f32 %v1016_v32, %v388_v35  ;;  %vm396_vm5 = vcmp.eq.f32.partialorder %v1474_v16, 0.0  ;;  %vm406_vm6 = vcmp.eq.f32.partialorder %v1477_v18, inf  ;;  %v412_v42 = vmul.f32 %v1548_v36, %v1487_v21 }
  0x4a   : > { %1027 = vrsqrt.f32 %v1537_v31  ;;  %v1024_v43 = vpop.eup %1023  ;;  %v401_v44 = vmul.f32 %v1018_v33, %v400_v39  ;;  %vm408_vm7 = vcmp.eq.f32.partialorder %v1477_v18, 0.0  ;;  %v409_v45 = vand.u32 2147483648, %v1477_v18  ;;  %s683_s10 = scalar_lea.hbm %s1785_s5, %s1421_s7  ;;  %s1674_s11 = scalar_lea.vmem [#allocation11], %s1404_s14 }
  0x4b   : > { %v477_v46 = vand.u32 2147483648, %v1466_v12  ;;  %v390_v47 = vmul.f32 0.5, %v389_v41  ;;  %v456_v48 = vmul.f32 %v1024_v43, %v1434_v2  ;;  %v413_v49 = vmul.f32 %v1548_v36, %v412_v42  ;;  %v1026_v50 = vpop.eup %1025  ;;  %s685_s30 = sshll.u32 %s1674_s11, 4  ;;  %s1689_s27 = sshll.u32 %s683_s10, 4  ;;  %s686_s30 = int_to_ptr.vmem [resolvable:$true] %s685_s30  ;;  %s688_s27 = int_to_ptr.hbm [resolvable:$true] %s1689_s27 }
  0x4c   : > { %vm418_vm8 = vcmp.eq.f32.partialorder %v1487_v21, inf  ;;  %vm462_vm9 = vcmp.eq.f32.partialorder %v1434_v2, inf  ;;  %v402_v51 = vmul.f32 0.5, %v401_v44  ;;  %vm420_vm10 = vcmp.eq.f32.partialorder %v1487_v21, 0.0  ;;  %s627_s29 = scalar_lea.sflag [#allocation12], %s1401_s28  ;;  %s1177_s24 = sshra.s32 %s688_s27, 4  ;;  %s1178_s24 = int_to_ptr.hbm [resolvable:$true] %s1177_s24 }
  0x4d   : > { %v421_v52 = vand.u32 2147483648, %v1487_v21  ;;  %v424_v53 = vmul.f32 %v1022_v40, %v1497_v25  ;;  %v391_v54 = vsub.f32 1.5, %v390_v47  ;;  %v457_v55 = vmul.f32 %v1024_v43, %v456_v48  ;;  %s1179_s21 = scalar_lea.hbm %s1178_s24, 32  ;;  %s1183_s12 = scalar_lea.hbm %s1785_s5, 64 }
  0x4e   : > { %vm464_vm11 = vcmp.eq.f32.partialorder %v1434_v2, 0.0  ;;  %v468_v56 = vmul.f32 %v1026_v50, %v1466_v12  ;;  %v414_v57 = vmul.f32 0.5, %v413_v49  ;;  %v403_v58 = vsub.f32 1.5, %v402_v51  ;;  %p1180_p7 = scmp.ne.s32.totalorder %s1178_s24, %s1179_s21  ;;  %p1184_p13 = scmp.lt.s32.totalorder %s1178_s24, %s1785_s5 }
  0x4f   : > { %vm474_vm12 = vcmp.eq.f32.partialorder %v1466_v12, inf  ;;  %v489_v59 = vand.u32 2147483648, %v1537_v31  ;;  %v425_v60 = vmul.f32 %v1022_v40, %v424_v53  ;;  %vm430_vm13 = vcmp.eq.f32.partialorder %v1497_v25, inf  ;;  %p1185_p0 = scmp.lt.s32.totalorder %s1183_s12, %s1179_s21 }
  0x50   : > { %v1028_v61 = vpop.eup %1027  ;;  %v392_v62 = vmul.f32 %v1016_v32, %v391_v54  ;;  %v458_v63 = vmul.f32 0.5, %v457_v55  ;;  %v469_v5 = vmul.f32 %v1026_v50, %v468_v56  ;;  %vm476_vm14 = vcmp.eq.f32.partialorder %v1466_v12, 0.0  ;;  %p1181_p8 = pnand %p1180_p7, %p1373_p9 }
  0x51   : > { %v415_v6 = vsub.f32 1.5, %v414_v57  ;;  %vm432_vm15 = vcmp.eq.f32.partialorder %v1497_v25, 0.0  ;;  %vm519_vm3 = vcmp.ge.f32.partialorder %v1434_v2, 0.0  ;;  %v404_v8 = vmul.f32 %v1018_v33, %v403_v58  ;;  %p1186_p1 = por %p1185_p0, %p1184_p13 }
  0x52   : > { %v480_v9 = vmul.f32 %v1028_v61, %v1537_v31  ;;  %v426_v10 = vmul.f32 0.5, %v425_v60  ;;  %1029 = vrsqrt.f32 %v1544_v34  ;;  %v393_v11 = vmul.f32 %v392_v62, %v1474_v16  ;;  %p1182_p10 = pneg %p1181_p8 }
  0x53   : > { %v459_v13 = vsub.f32 1.5, %v458_v63  ;;  %v470_v14 = vmul.f32 0.5, %v469_v5  ;;  %v416_v15 = vmul.f32 %v1548_v36, %v415_v6  ;;  %vm486_vm2 = vcmp.eq.f32.partialorder %v1537_v31, inf }
  0x54   : > { %v405_v17 = vmul.f32 %v404_v8, %v1477_v18  ;;  %vm520_vm1 = vcmp.ge.f32.partialorder %v1466_v12, 0.0  ;;  %v481_v19 = vmul.f32 %v1028_v61, %v480_v9  ;;  %vm488_vm0 = vcmp.eq.f32.partialorder %v1537_v31, 0.0  ;;  %p1187_p2 = pnand %p1186_p1, %p1182_p10 }
  0x55   : > { %v427_v20 = vsub.f32 1.5, %v426_v10  ;;  %v433_v22 = vand.u32 2147483648, %v1497_v25  ;;  %v395_v23 = vsel %vm394_vm4, %v1474_v16, %v393_v11  ;;  %v460_v24 = vmul.f32 %v1024_v43, %v459_v13 }
  0x56   : > { %v471_v26 = vsub.f32 1.5, %v470_v14  ;;  %v417_v27 = vmul.f32 %v416_v15, %v1487_v21  ;;  %v398_v28 = vsel %vm396_vm5, %v397_v37, %v395_v23  ;;  %v407_v29 = vsel %vm406_vm6, %v1477_v18, %v405_v17 }
  0x57   : > { %v482_v30 = vmul.f32 0.5, %v481_v19  ;;  %v428_v32 = vmul.f32 %v1022_v40, %v427_v20  ;;  %v435_v33 = vadd.f32 0.1, %v398_v28  ;;  %v461_v35 = vmul.f32 %v460_v24, %v1434_v2 }
  0x58   : > { %v410_v36 = vsel %vm408_vm7, %v409_v45, %v407_v29  ;;  %v472_v39 = vmul.f32 %v1026_v50, %v471_v26  ;;  %v1030_v41 = vpop.eup %1029  ;;  %v419_v16 = vsel %vm418_vm8, %v1487_v21, %v417_v27  ;;  %vm1800_vm4 = vcmp.eq.f32.partialorder %v1423_v0, %v1423_v0 }
  0x59   : > { %v436_v42 = vadd.f32 0.1, %v410_v36  ;;  %v483_v37 = vsub.f32 1.5, %v482_v30  ;;  %v429_v43 = vmul.f32 %v428_v32, %v1497_v25  ;;  %1031 = vlog2.f32 %v435_v33  ;;  %vm1644_vm5 = vmand %vm1800_vm4, %vm519_vm3 }
  0x5a   : > { %v463_v40 = vsel %vm462_vm9, %v1434_v2, %v461_v35  ;;  %v473_v44 = vmul.f32 %v472_v39, %v1466_v12  ;;  %v422_v18 = vsel %vm420_vm10, %v421_v52, %v419_v16  ;;  %v492_v21 = vmul.f32 %v1030_v41, %v1544_v34 }
  0x5b   : > { %v466_v45 = vsel %vm464_vm11, %v465_v38, %v463_v40  ;;  %1033 = vlog2.f32 %v436_v42  ;;  %v437_v47 = vadd.f32 0.1, %v422_v18  ;;  %v484_v48 = vmul.f32 %v1028_v61, %v483_v37 }
  0x5c   : > { %v503_v49 = vadd.f32 0.1, %v466_v45  ;;  %v475_v50 = vsel %vm474_vm12, %v1466_v12, %v473_v44  ;;  %v431_v51 = vsel %vm430_vm13, %v1497_v25, %v429_v43  ;;  %vm521_vm6 = vcmp.ge.f32.partialorder %v1537_v31, 0.0 }
  0x5d   : > { %v478_v38 = vsel %vm476_vm14, %v477_v46, %v475_v50  ;;  %1035 = vlog2.f32 %v437_v47  ;;  %v485_v52 = vmul.f32 %v484_v48, %v1537_v31  ;;  %v434_v53 = vsel %vm432_vm15, %v433_v22, %v431_v51 }
  0x5e   : > { %1037 = vlog2.f32 %v503_v49  ;;  %v504_v55 = vadd.f32 0.1, %v478_v38  ;;  %v493_v46 = vmul.f32 %v1030_v41, %v492_v21  ;;  %v438_v2 = vadd.f32 0.1, %v434_v53 }
  0x5f   : > { %v487_v25 = vsel %vm486_vm2, %v1537_v31, %v485_v52  ;;  %vm522_vm7 = vcmp.ge.f32.partialorder %v1544_v34, 0.0  ;;  %v908_v0 = vsel %vm1644_vm5, 1.0, %v1287_v4  ;;  %v1032_v56 = vpop.eup %1031  ;;  %vm1803_vm3 = vcmp.eq.f32.partialorder %v1425_v1, %v1425_v1 }
  0x60   : > { %1039 = vlog2.f32 %v504_v55  ;;  %vm1665_vm8 = vmand %vm1803_vm3, %vm520_vm1  ;;  %v490_v58 = vsel %vm488_vm0, %v489_v59, %v487_v25  ;;  %v494_v60 = vmul.f32 0.5, %v493_v46  ;;  %v440_v12 = vmul.f32 0.6931472, %v1032_v56  ;;  %607 = vst [vmem:[%s1674_s11] sm:$0xff] %v908_v0 }
  0x61   : > { %v1034_v61 = vpop.eup %1033  ;;  %v505_v62 = vadd.f32 0.1, %v490_v58  ;;  %vm1806_vm1 = vcmp.eq.f32.partialorder %v1438_v3, %v1438_v3  ;;  %v909_v59 = vsel %vm1665_vm8, 1.0, %v1287_v4  ;;  %vm1809_vm0 = vcmp.eq.f32.partialorder %v1450_v7, %v1450_v7 }
  0x62   : > { %vm1682_vm2 = vmand %vm1806_vm1, %vm521_vm6  ;;  %v442_v63 = vmul.f32 0.6931472, %v1034_v61  ;;  %v495_v5 = vsub.f32 1.5, %v494_v60  ;;  %vm498_vm10 = vcmp.eq.f32.partialorder %v1544_v34, inf  ;;  %vm500_vm11 = vcmp.eq.f32.partialorder %v1544_v34, 0.0  ;;  %608 = vst [vmem:[%s1674_s11 + $0x8] sm:$0xff] %v909_v59 }
  0x63   : > { %vm1696_vm9 = vmand %vm1809_vm0, %vm522_vm7  ;;  %v910_v31 = vsel %vm1682_vm2, 1.0, %v1287_v4  ;;  %v1036_v6 = vpop.eup %1035  ;;  %1041 = vlog2.f32 %v505_v62  ;;  %v447_v7 = vmul.f32 0.4342945, %v440_v12  ;;  %v501_v13 = vand.u32 2147483648, %v1544_v34 }
  0x64   : > { %v911_v8 = vsel %vm1696_vm9, 1.0, %v1287_v4  ;;  %v1038_v9 = vpop.eup %1037  ;;  %v496_v10 = vmul.f32 %v1030_v41, %v495_v5  ;;  %609 = vst [vmem:[%s1674_s11 + $0x10] sm:$0xff] %v910_v31  ;;  %v448_v15 = vmul.f32 0.4342945, %v442_v63  ;;  %v444_v4 = vmul.f32 0.6931472, %v1036_v6 }
  0x65   : > { %v508_v11 = vmul.f32 0.6931472, %v1038_v9  ;;  %1043 = vlog2.f32 %v438_v2  ;;  %610 = vst [vmem:[%s1674_s11 + $0x18] sm:$0xff] %v911_v8 }
  0x66   : > { %v1040_v14 = vpop.eup %1039  ;;  %v497_v17 = vmul.f32 %v496_v10, %v1544_v34 }
  0x67   : > { %v515_v19 = vmul.f32 0.4342945, %v508_v11  ;;  %v510_v20 = vmul.f32 0.6931472, %v1040_v14 }
  0x68   : > { %1190 = shalt.err (!%p1187_p2)
}
  0x69   : > { %939 = dma.vmem_to_hbm [thread:$0]  (%p1373_p9), %s686_s30, 512, %s688_s27, %s627_s29   ;;  %v499_v22 = vsel %vm498_vm10, %v1544_v34, %v497_v17  ;;  %v1042_v23 = vpop.eup %1041  ;;  %v527_v24 = vsub.f32 %v447_v7, %v515_v19  ;;  %v516_v26 = vmul.f32 0.4342945, %v510_v20  ;;  %v449_v28 = vmul.f32 0.4342945, %v444_v4 }
  0x6a   : > { %v502_v27 = vsel %vm500_vm11, %v501_v13, %v499_v22  ;;  %v512_v29 = vmul.f32 0.6931472, %v1042_v23  ;;  %s321_s28 = scalar_lea.vmem [#allocation10], %s1404_s14  ;;  %s668_s25 = scalar_lea.hbm %s1784_s4, %s1421_s7 }
  0x6b   : > { %v506_v30 = vadd.f32 0.1, %v502_v27  ;;  %v531_v32 = vsel %vm1644_vm5, %v527_v24, 0.0  ;;  %v528_v33 = vsub.f32 %v448_v15, %v516_v26  ;;  %v1044_v35 = vpop.eup %1043  ;;  %s670_s14 = sshll.u32 %s321_s28, 4  ;;  %s672_s10 = sshll.u32 %s668_s25, 4  ;;  %s671_s14 = int_to_ptr.vmem [resolvable:$true] %s670_s14  ;;  %s673_s10 = int_to_ptr.hbm [resolvable:$true] %s672_s10 }
  0x6c   : > { %v535_v36 = vmul.f32 %v531_v32, %v531_v32  ;;  %v517_v39 = vmul.f32 0.4342945, %v512_v29  ;;  %v446_v37 = vmul.f32 0.6931472, %v1044_v35  ;;  %s1205_s11 = sshra.s32 %s673_s10, 4  ;;  %s1211_s7 = scalar_lea.hbm %s1784_s4, 64  ;;  %s1206_s11 = int_to_ptr.hbm [resolvable:$true] %s1205_s11 }
  0x6d   : > { %1045 = vlog2.f32 %v506_v30  ;;  %v532_v41 = vsel %vm1665_vm8, %v528_v33, 0.0  ;;  %s1207_s30 = scalar_lea.hbm %s1206_s11, 32  ;;  %p1212_p6 = scmp.lt.s32.totalorder %s1206_s11, %s1784_s4 }
  0x6e   : > { %v536_v42 = vmul.f32 %v532_v41, %v532_v41  ;;  %v529_v16 = vsub.f32 %v449_v28, %v517_v39  ;;  %591 = vst [vmem:[%s321_s28] sm:$0xff] %v535_v36  ;;  %v450_v44 = vmul.f32 0.4342945, %v446_v37  ;;  %p1208_p3 = scmp.ne.s32.totalorder %s1206_s11, %s1207_s30  ;;  %p1213_p7 = scmp.lt.s32.totalorder %s1211_s7, %s1207_s30 }
  0x70   : > { %v533_v34 = vsel %vm1682_vm2, %v529_v16, 0.0  ;;  %592 = vst [vmem:[%s321_s28 + $0x8] sm:$0xff] %v536_v42  ;;  %p1209_p4 = pnand %p1208_p3, %p1373_p9  ;;  %p1214_p8 = por %p1213_p7, %p1212_p6 }
  0x71   : > { %v537_v43 = vmul.f32 %v533_v34, %v533_v34 }
  0x72   : > { %p1210_p5 = pneg %p1209_p4 }
  0x73   : > { %v1046_v40 = vpop.eup %1045  ;;  %593 = vst [vmem:[%s321_s28 + $0x10] sm:$0xff] %v537_v43 }
  0x74   : > { %v514_v18 = vmul.f32 0.6931472, %v1046_v40  ;;  %p1215_p10 = pnand %p1214_p8, %p1210_p5 }
  0x76   : > { %v518_v45 = vmul.f32 0.4342945, %v514_v18 }
  0x78   : > { %v530_v47 = vsub.f32 %v450_v44, %v518_v45 }
  0x7a   : > { %v534_v48 = vsel %vm1696_vm9, %v530_v47, 0.0 }
  0x7b   : > { %v538_v49 = vmul.f32 %v534_v48, %v534_v48 }
  0x7d   : > { %594 = vst [vmem:[%s321_s28 + $0x18] sm:$0xff] %v538_v49 }
  0x7e   : > { %1218 = shalt.err (!%p1215_p10)
}
  0x7f   : > { %938 = dma.vmem_to_hbm [thread:$0]  (%p1373_p9), %s671_s14, 512, %s673_s10, %s1515_s22  }
  0x80 PF: > { %s699_s16 = sand.u32 1, %s1265_s18   ;;  %p952_p13 = pnand %p890_p12, %p1382_p11 }
  0x81   : > { %s700_s17 = scalar_lea.sflag [#allocation4], %s699_s16 }
  0x82   : > { %p953_p0 = pneg %p952_p13 }
  0x84   : > { %1252 = dma.done.wait (%p953_p0), %s700_s17, 512  }
  0x85   : > { %1254 = vsyncadd (%p953_p0), %s700_s17, 4294966784  ;;  %s1812_s12 = sadd.s32 4294967294, %s1285_s23  }
  0x86   : > { %s709_s13 = sand.u32 1, %s1812_s12  }
  0x87   : > { %s710_s26 = scalar_lea.sflag [#allocation9], %s709_s13 }
  0x88   : > { %1256 = dma.done.wait (%p953_p0), %s710_s26, 1024  }
  0x89   : > { %1258 = vsyncadd (%p953_p0), %s710_s26, 4294966272  ;;  %s730_s6 = scalar_lea.sflag [#allocation12], %s699_s16 }
  0x8a   : > { %1260 = dma.done.wait (%p953_p0), %s730_s6, 512  }
  0x8b   : > { %1262 = vsyncadd (%p953_p0), %s730_s6, 4294966784  ;;  %s31_s23 = sadd.s32 1, %s1285_s23   ;;  %s1813_s8 = sld [smem:[#allocation20_spill]] }
  0x8c   : > { %p28_p9 = scmp.ge.s32.totalorder %s31_s23, 4   ;;  %s1814_s21 = sld [smem:[#allocation18_spill]] }
  0x8d   : > { %s1815_s22 = sld [smem:[#allocation19_spill]]  ;;  %s1816_s18 = smov %s1269_s19 }
  0x8e   : > { %s1817_s19 = smov %s1273_s20  ;;  %30 = sbr.rel (!%p28_p9) target bundleno = 12 (0xc), region = 139 }
  0x91   : > { %s1818_s20 = smov %s1813_s8 }
  0x93   :  { %736 = vsyncpa [#allocation3], 1 }
  0x94   :  { %738 = vsyncpa [#allocation3 + $0x1], 1 }
  0x95   :  { %739 = vsyncpa [#allocation6], 1 }
  0x96   :  { %741 = vsyncpa [#allocation6 + $0x1], 1 }
  0x97   :  { %742 = vsyncpa [#allocation4], 1 }
  0x98   :  { %744 = vsyncpa [#allocation4 + $0x1], 1 }
  0x99   :  { %745 = vsyncpa [#allocation9], 1 }
  0x9a   :  { %747 = vsyncpa [#allocation9 + $0x1], 1 }
  0x9b   :  { %748 = vsyncpa [#allocation12], 1 }
  0x9c   :  { %750 = vsyncpa [#allocation12 + $0x1], 1 }

</bundles_post_ra>
